<compile_context>
chip_gen: v5e
topology: v5e:2x2
jax: 0.10.0
libtpu: 0.0.40
codegen_flags: <defaults>
</compile_context>

<pallas_src>
import functools

import jax
import jax.numpy as jnp
from jax.experimental import pallas as pl
from jax.experimental.pallas import tpu as pltpu


def _round_up(x, m):
    return ((x + m - 1) // m) * m


def _resident(shape):
    """Whole-array block that stays resident across the grid."""
    zeros = (0,) * len(shape)
    return pl.BlockSpec(shape, lambda n, e: zeros)


def node_model_kernel(col_ref, edge_attr_ref,
                      w1_ref, b1_ref, w1f_ref, b1f_ref,
                      w2_ref, b2_ref, w2f_ref, b2f_ref,
                      out_ref, acc_ref, *, n_layers):
    e = pl.program_id(1)
    num_e = pl.num_programs(1)
    tn = out_ref.shape[0]
    te = col_ref.shape[1]

    # ---------- init accumulator at the start of each edge reduction ----------
    @pl.when(e == 0)
    def _():
        acc_ref[...] = jnp.zeros_like(acc_ref)

    # ---------- MLP1 on this edge tile: bf16 MXU operands, f32 accumulate ----------
    h = edge_attr_ref[...]                                   # (te, H) bf16
    for i in range(n_layers):                                # static unroll
        z = jnp.dot(h, w1_ref[i], preferred_element_type=jnp.float32) + b1_ref[i]
        h = jnp.maximum(z, 0.0).astype(jnp.bfloat16)         # ReLU in f32, cast for MXU
    h = (jnp.dot(h, w1f_ref[...], preferred_element_type=jnp.float32)
         + b1f_ref[...])                                     # (te, H) f32

    # ---------- per-tile one-hot scatter: (tn, te) @ (te, H) on the MXU ----------
    col = col_ref[...]                                       # (1, te) int32 global ids (-1 = pad)
    row0 = pl.program_id(0) * tn
    node_ids = jax.lax.broadcasted_iota(jnp.int32, (tn, te), 0) + row0
    one_hot = (node_ids == col).astype(jnp.bfloat16)         # 0/1 exact in bf16
    acc_ref[...] += jnp.dot(one_hot, h.astype(jnp.bfloat16),
                            preferred_element_type=jnp.float32)

    # ---------- MLP2 + write-out once the edge reduction is complete ----------
    @pl.when(e == num_e - 1)
    def _():
        g = acc_ref[...]                                     # (tn, H) f32
        for i in range(n_layers):
            z = jnp.dot(g.astype(jnp.bfloat16), w2_ref[i],
                        preferred_element_type=jnp.float32) + b2_ref[i]
            g = jnp.maximum(z, 0.0)
        g = (jnp.dot(g.astype(jnp.bfloat16), w2f_ref[...],
                     preferred_element_type=jnp.float32) + b2f_ref[...])
        out_ref[...] = g.astype(out_ref.dtype)


def init_mlp_params(key, hidden_dim, n_layers):
    """nn.Linear-style init (uniform +-1/sqrt(fan_in)); weights stored (in, out)."""
    bound = 1.0 / jnp.sqrt(hidden_dim)
    keys = jax.random.split(key, 4)
    w_hidden = jax.random.uniform(keys[0], (n_layers, hidden_dim, hidden_dim),
                                  jnp.float32, -bound, bound)
    b_hidden = jax.random.uniform(keys[1], (n_layers, 1, hidden_dim),
                                  jnp.float32, -bound, bound)
    w_final = jax.random.uniform(keys[2], (hidden_dim, hidden_dim),
                                 jnp.float32, -bound, bound)
    b_final = jax.random.uniform(keys[3], (1, hidden_dim),
                                 jnp.float32, -bound, bound)
    return w_hidden, b_hidden, w_final, b_final


def node_model_forward(x, edge_index, edge_attr, params, *, n_layers,
                       tile_n=None, tile_e=None):
    num_nodes, hidden_dim = x.shape
    num_edges = edge_attr.shape[0]
    H = hidden_dim

    # Tile sizes.  Edge axis is the streamed/reduction axis: keep te a multiple
    # of 128 (full MXU K passes on v5e).  On v7x (64 MiB VMEM) halve the edge
    # tile you would use on v6e; at these defaults the footprint is << 1 MiB.
    tn = tile_n if tile_n is not None else min(256, _round_up(num_nodes, 8))
    te = tile_e if tile_e is not None else min(1024, _round_up(num_edges, 128))
    n_pad = _round_up(num_nodes, tn)
    e_pad = _round_up(num_edges, te)

    # Pad + lay out inputs.  Padded edges get col = -1 -> never match any node.
    col = edge_index[1].astype(jnp.int32)
    col = jnp.pad(col, (0, e_pad - num_edges), constant_values=-1).reshape(1, e_pad)
    ea = jnp.pad(edge_attr, ((0, e_pad - num_edges), (0, 0))).astype(jnp.bfloat16)

    # bf16 MXU operands; biases stay f32 (added to the f32 accumulator).
    w1 = params["w1"].astype(jnp.bfloat16)
    w1f = params["w1f"].astype(jnp.bfloat16)
    w2 = params["w2"].astype(jnp.bfloat16)
    w2f = params["w2f"].astype(jnp.bfloat16)
    b1, b1f, b2, b2f = params["b1"], params["b1f"], params["b2"], params["b2f"]

    grid = (n_pad // tn, e_pad // te)

    # Advisory cost estimate (edge_attr is re-streamed once per node tile).
    flops = int(grid[0] * (n_layers + 1) * 2 * e_pad * H * H     # MLP1
                + 2 * n_pad * e_pad * H                          # one-hot scatter
                + (n_layers + 1) * 2 * n_pad * H * H)            # MLP2
    bytes_accessed = int(grid[0] * (e_pad * H * 2 + e_pad * 4)   # edge_attr + col
                         + n_pad * H * 4                         # output
                         + 4 * (n_layers + 1) * (H * H * 2 + H * 4))  # params

    kernel = functools.partial(node_model_kernel, n_layers=n_layers)

    out_pad = pl.pallas_call(
        kernel,
        out_shape=jax.ShapeDtypeStruct((n_pad, H), jnp.float32),
        grid=grid,
        in_specs=[
            pl.BlockSpec((1, te), lambda n, e: (0, e)),    # col tile
            pl.BlockSpec((te, H), lambda n, e: (e, 0)),    # edge_attr tile
            _resident(w1.shape), _resident(b1.shape),
            _resident(w1f.shape), _resident(b1f.shape),
            _resident(w2.shape), _resident(b2.shape),
            _resident(w2f.shape), _resident(b2f.shape),
        ],
        out_specs=pl.BlockSpec((tn, H), lambda n, e: (n, 0)),
        scratch_shapes=[pltpu.VMEM((tn, H), jnp.float32)],
        compiler_params=pltpu.CompilerParams(
            dimension_semantics=("parallel", "arbitrary"),
            vmem_limit_bytes=64 * 1024 * 1024),
        cost_estimate=pl.CostEstimate(flops=flops, transcendentals=0,
                                      bytes_accessed=bytes_accessed),
    )(col, ea, w1, b1, w1f, b1f, w2, b2, w2f, b2f)

    return out_pad[:num_nodes]


def node_model_reference(x, edge_index, edge_attr, params, *, n_layers):
    """Pure-JAX reference mirroring the kernel's bf16-operand / f32-accumulate math."""
    bf16 = jnp.bfloat16

    def mlp(h, w, b, wf, bfin):
        for i in range(n_layers):
            h = jnp.maximum(
                jnp.dot(h.astype(bf16), w[i].astype(bf16),
                        preferred_element_type=jnp.float32) + b[i], 0.0)
        return jnp.dot(h.astype(bf16), wf.astype(bf16),
                       preferred_element_type=jnp.float32) + bfin

    col = edge_index[1]
    out = mlp(edge_attr, params["w1"], params["b1"], params["w1f"], params["b1f"])
    out = out.astype(bf16).astype(jnp.float32)          # kernel casts before scatter matmul
    agg = jax.ops.segment_sum(out, col, num_segments=x.shape[0])
    return mlp(agg, params["w2"], params["b2"], params["w2f"], params["b2f"])


if __name__ == "__main__":
    # Small but grid-exercising shapes: 2 node tiles x 3 edge tiles (with padding).
    num_nodes, num_edges, hidden_dim, n_layers = 16, 300, 32, 2

    key = jax.random.PRNGKey(0)
    k_x, k_ei, k_ea, k_m1, k_m2 = jax.random.split(key, 5)

    x = jax.random.normal(k_x, (num_nodes, hidden_dim), jnp.float32)
    edge_index = jax.random.randint(k_ei, (2, num_edges), 0, num_nodes, jnp.int32)
    edge_attr = jax.random.normal(k_ea, (num_edges, hidden_dim), jnp.float32)

    w1, b1, w1f, b1f = init_mlp_params(k_m1, hidden_dim, n_layers)
    w2, b2, w2f, b2f = init_mlp_params(k_m2, hidden_dim, n_layers)
    params = dict(w1=w1, b1=b1, w1f=w1f, b1f=b1f,
                  w2=w2, b2=b2, w2f=w2f, b2f=b2f)

    out = node_model_forward(x, edge_index, edge_attr, params,
                             n_layers=n_layers, tile_n=8, tile_e=128)
    out = jax.block_until_ready(out)

    ref = node_model_reference(x, edge_index, edge_attr, params, n_layers=n_layers)
    assert out.shape == (num_nodes, hidden_dim)
    assert jnp.allclose(out, ref, atol=2e-2, rtol=2e-2)

    print("KERNEL_OK")
</pallas_src>

<mosaic_0001>
module attributes {stable_mosaic.version = 11 : i64} {
  func.func @node_model_kernel(%arg0: i32, %arg1: i32, %arg2: memref<1x128xi32, #tpu.memory_space<vmem>>, %arg3: memref<128x32xbf16, #tpu.memory_space<vmem>>, %arg4: memref<2x32x32xbf16, #tpu.memory_space<vmem>>, %arg5: memref<2x1x32xf32, #tpu.memory_space<vmem>>, %arg6: memref<32x32xbf16, #tpu.memory_space<vmem>>, %arg7: memref<1x32xf32, #tpu.memory_space<vmem>>, %arg8: memref<2x32x32xbf16, #tpu.memory_space<vmem>>, %arg9: memref<2x1x32xf32, #tpu.memory_space<vmem>>, %arg10: memref<32x32xbf16, #tpu.memory_space<vmem>>, %arg11: memref<1x32xf32, #tpu.memory_space<vmem>>, %arg12: memref<8x32xf32, #tpu.memory_space<vmem>>, %arg13: memref<8x32xf32, #tpu.memory_space<vmem>>) attributes {dimension_semantics = [#tpu.dimension_semantics<parallel>, #tpu.dimension_semantics<arbitrary>], iteration_bounds = array<i64: 2, 3>, scalar_prefetch = 0 : i64, scratch_operands = 1 : i64, tpu.core_type = #tpu.core_type<tc>, window_params = [{transform_indices = @transform_0, window_bounds = array<i64: 1, 128>}, {transform_indices = @transform_1, window_bounds = array<i64: 128, 32>}, {pipeline_mode = #tpu.pipeline_mode<synchronous>, transform_indices = @transform_2, window_bounds = array<i64: 2, 32, 32>}, {pipeline_mode = #tpu.pipeline_mode<synchronous>, transform_indices = @transform_3, window_bounds = array<i64: 2, 1, 32>}, {pipeline_mode = #tpu.pipeline_mode<synchronous>, transform_indices = @transform_4, window_bounds = array<i64: 32, 32>}, {pipeline_mode = #tpu.pipeline_mode<synchronous>, transform_indices = @transform_5, window_bounds = array<i64: 1, 32>}, {pipeline_mode = #tpu.pipeline_mode<synchronous>, transform_indices = @transform_6, window_bounds = array<i64: 2, 32, 32>}, {pipeline_mode = #tpu.pipeline_mode<synchronous>, transform_indices = @transform_7, window_bounds = array<i64: 2, 1, 32>}, {pipeline_mode = #tpu.pipeline_mode<synchronous>, transform_indices = @transform_8, window_bounds = array<i64: 32, 32>}, {pipeline_mode = #tpu.pipeline_mode<synchronous>, transform_indices = @transform_9, window_bounds = array<i64: 1, 32>}, {transform_indices = @transform_10, window_bounds = array<i64: 8, 32>}]} {
    %c0_i32 = arith.constant 0 : i32
    %0 = arith.cmpi eq, %arg1, %c0_i32 : i32
    %1 = arith.extui %0 : i1 to i32
    %c0_i32_0 = arith.constant 0 : i32
    %2 = arith.cmpi ne, %1, %c0_i32_0 : i32
    scf.if %2 {
      %cst_29 = arith.constant 0.000000e+00 : f32
      %47 = vector.broadcast %cst_29 : f32 to vector<8x32xf32>
      %c0_30 = arith.constant 0 : index
      %c0_31 = arith.constant 0 : index
      %48 = vector.load %arg13[%c0_30, %c0_31] : memref<8x32xf32, #tpu.memory_space<vmem>>, vector<8x32xf32>
      tpu.vector_store %arg13[%c0_30, %c0_31], %47 {strides = array<i32>} : memref<8x32xf32, #tpu.memory_space<vmem>>, vector<8x32xf32>,
    } else {
    }
    %c0 = arith.constant 0 : index
    %c0_1 = arith.constant 0 : index
    %3 = vector.load %arg3[%c0, %c0_1] : memref<128x32xbf16, #tpu.memory_space<vmem>>, vector<128x32xbf16>
    %c0_2 = arith.constant 0 : index
    %c0_3 = arith.constant 0 : index
    %c0_4 = arith.constant 0 : index
    %4 = vector.load %arg4[%c0_2, %c0_3, %c0_4] : memref<2x32x32xbf16, #tpu.memory_space<vmem>>, vector<1x32x32xbf16>
    %5 = vector.shape_cast %4 : vector<1x32x32xbf16> to vector<32x32xbf16>
    %cst = arith.constant dense<0.000000e+00> : vector<128x32xf32>
    %6 = tpu.matmul %3, %5, %cst {dimension_numbers = #tpu.dot_dimension_numbers<[1], [0], [0], [1], [0, 0, 1, 1], [], []>} : vector<128x32xbf16>, vector<32x32xbf16>, vector<128x32xf32> -> vector<128x32xf32>
    %c0_5 = arith.constant 0 : index
    %c0_6 = arith.constant 0 : index
    %c0_7 = arith.constant 0 : index
    %7 = vector.load %arg5[%c0_5, %c0_6, %c0_7] : memref<2x1x32xf32, #tpu.memory_space<vmem>>, vector<1x1x32xf32>
    %8 = vector.shape_cast %7 : vector<1x1x32xf32> to vector<1x32xf32>
    %9 = vector.broadcast %8 : vector<1x32xf32> to vector<128x32xf32>
    %10 = arith.addf %6, %9 : vector<128x32xf32>
    %cst_8 = arith.constant 0.000000e+00 : f32
    %11 = vector.broadcast %cst_8 : f32 to vector<128x32xf32>
    %12 = arith.maximumf %10, %11 : vector<128x32xf32>
    %13 = arith.truncf %12 : vector<128x32xf32> to vector<128x32xbf16>
    %c1 = arith.constant 1 : index
    %c0_9 = arith.constant 0 : index
    %c0_10 = arith.constant 0 : index
    %14 = vector.load %arg4[%c1, %c0_9, %c0_10] : memref<2x32x32xbf16, #tpu.memory_space<vmem>>, vector<1x32x32xbf16>
    %15 = vector.shape_cast %14 : vector<1x32x32xbf16> to vector<32x32xbf16>
    %cst_11 = arith.constant dense<0.000000e+00> : vector<128x32xf32>
    %16 = tpu.matmul %13, %15, %cst_11 {dimension_numbers = #tpu.dot_dimension_numbers<[1], [0], [0], [1], [0, 0, 1, 1], [], []>} : vector<128x32xbf16>, vector<32x32xbf16>, vector<128x32xf32> -> vector<128x32xf32>
    %c1_12 = arith.constant 1 : index
    %c0_13 = arith.constant 0 : index
    %c0_14 = arith.constant 0 : index
    %17 = vector.load %arg5[%c1_12, %c0_13, %c0_14] : memref<2x1x32xf32, #tpu.memory_space<vmem>>, vector<1x1x32xf32>
    %18 = vector.shape_cast %17 : vector<1x1x32xf32> to vector<1x32xf32>
    %19 = vector.broadcast %18 : vector<1x32xf32> to vector<128x32xf32>
    %20 = arith.addf %16, %19 : vector<128x32xf32>
    %cst_15 = arith.constant 0.000000e+00 : f32
    %21 = vector.broadcast %cst_15 : f32 to vector<128x32xf32>
    %22 = arith.maximumf %20, %21 : vector<128x32xf32>
    %23 = arith.truncf %22 : vector<128x32xf32> to vector<128x32xbf16>
    %c0_16 = arith.constant 0 : index
    %c0_17 = arith.constant 0 : index
    %24 = vector.load %arg6[%c0_16, %c0_17] : memref<32x32xbf16, #tpu.memory_space<vmem>>, vector<32x32xbf16>
    %cst_18 = arith.constant dense<0.000000e+00> : vector<128x32xf32>
    %25 = tpu.matmul %23, %24, %cst_18 {dimension_numbers = #tpu.dot_dimension_numbers<[1], [0], [0], [1], [0, 0, 1, 1], [], []>} : vector<128x32xbf16>, vector<32x32xbf16>, vector<128x32xf32> -> vector<128x32xf32>
    %c0_19 = arith.constant 0 : index
    %c0_20 = arith.constant 0 : index
    %26 = vector.load %arg7[%c0_19, %c0_20] : memref<1x32xf32, #tpu.memory_space<vmem>>, vector<1x32xf32>
    %27 = vector.broadcast %26 : vector<1x32xf32> to vector<128x32xf32>
    %28 = arith.addf %25, %27 : vector<128x32xf32>
    %c0_21 = arith.constant 0 : index
    %c0_22 = arith.constant 0 : index
    %29 = vector.load %arg2[%c0_21, %c0_22] : memref<1x128xi32, #tpu.memory_space<vmem>>, vector<1x128xi32>
    %c8_i32 = arith.constant 8 : i32
    %30 = arith.muli %arg0, %c8_i32 : i32
    %31 = tpu.iota {dimensions = array<i32: 0>} : vector<8x128xi32>
    %32 = vector.broadcast %30 : i32 to vector<8x128xi32>
    %33 = arith.addi %31, %32 : vector<8x128xi32>
    %34 = vector.broadcast %29 : vector<1x128xi32> to vector<8x128xi32>
    %35 = arith.cmpi eq, %33, %34 : vector<8x128xi32>
    %36 = arith.extui %35 : vector<8x128xi1> to vector<8x128xi32>
    %37 = arith.sitofp %36 : vector<8x128xi32> to vector<8x128xf32>
    %38 = arith.truncf %37 : vector<8x128xf32> to vector<8x128xbf16>
    %c0_23 = arith.constant 0 : index
    %c0_24 = arith.constant 0 : index
    %39 = vector.load %arg13[%c0_23, %c0_24] : memref<8x32xf32, #tpu.memory_space<vmem>>, vector<8x32xf32>
    %40 = arith.truncf %28 : vector<128x32xf32> to vector<128x32xbf16>
    %cst_25 = arith.constant dense<0.000000e+00> : vector<8x32xf32>
    %41 = tpu.matmul %38, %40, %cst_25 {dimension_numbers = #tpu.dot_dimension_numbers<[1], [0], [0], [1], [0, 0, 1, 1], [], []>} : vector<8x128xbf16>, vector<128x32xbf16>, vector<8x32xf32> -> vector<8x32xf32>
    %42 = arith.addf %39, %41 : vector<8x32xf32>
    %c0_26 = arith.constant 0 : index
    %c0_27 = arith.constant 0 : index
    %43 = vector.load %arg13[%c0_26, %c0_27] : memref<8x32xf32, #tpu.memory_space<vmem>>, vector<8x32xf32>
    tpu.vector_store %arg13[%c0_26, %c0_27], %42 {strides = array<i32>} : memref<8x32xf32, #tpu.memory_space<vmem>>, vector<8x32xf32>,
    %c2_i32 = arith.constant 2 : i32
    %44 = arith.cmpi eq, %arg1, %c2_i32 : i32
    %45 = arith.extui %44 : i1 to i32
    %c0_i32_28 = arith.constant 0 : i32
    %46 = arith.cmpi ne, %45, %c0_i32_28 : i32
    scf.if %46 {
      %c0_29 = arith.constant 0 : index
      %c0_30 = arith.constant 0 : index
      %47 = vector.load %arg13[%c0_29, %c0_30] : memref<8x32xf32, #tpu.memory_space<vmem>>, vector<8x32xf32>
      %48 = arith.truncf %47 : vector<8x32xf32> to vector<8x32xbf16>
      %c0_31 = arith.constant 0 : index
      %c0_32 = arith.constant 0 : index
      %c0_33 = arith.constant 0 : index
      %49 = vector.load %arg8[%c0_31, %c0_32, %c0_33] : memref<2x32x32xbf16, #tpu.memory_space<vmem>>, vector<1x32x32xbf16>
      %50 = vector.shape_cast %49 : vector<1x32x32xbf16> to vector<32x32xbf16>
      %cst_34 = arith.constant dense<0.000000e+00> : vector<8x32xf32>
      %51 = tpu.matmul %48, %50, %cst_34 {dimension_numbers = #tpu.dot_dimension_numbers<[1], [0], [0], [1], [0, 0, 1, 1], [], []>} : vector<8x32xbf16>, vector<32x32xbf16>, vector<8x32xf32> -> vector<8x32xf32>
      %c0_35 = arith.constant 0 : index
      %c0_36 = arith.constant 0 : index
      %c0_37 = arith.constant 0 : index
      %52 = vector.load %arg9[%c0_35, %c0_36, %c0_37] : memref<2x1x32xf32, #tpu.memory_space<vmem>>, vector<1x1x32xf32>
      %53 = vector.shape_cast %52 : vector<1x1x32xf32> to vector<1x32xf32>
      %54 = vector.broadcast %53 : vector<1x32xf32> to vector<8x32xf32>
      %55 = arith.addf %51, %54 : vector<8x32xf32>
      %cst_38 = arith.constant 0.000000e+00 : f32
      %56 = vector.broadcast %cst_38 : f32 to vector<8x32xf32>
      %57 = arith.maximumf %55, %56 : vector<8x32xf32>
      %58 = arith.truncf %57 : vector<8x32xf32> to vector<8x32xbf16>
      %c1_39 = arith.constant 1 : index
      %c0_40 = arith.constant 0 : index
      %c0_41 = arith.constant 0 : index
      %59 = vector.load %arg8[%c1_39, %c0_40, %c0_41] : memref<2x32x32xbf16, #tpu.memory_space<vmem>>, vector<1x32x32xbf16>
      %60 = vector.shape_cast %59 : vector<1x32x32xbf16> to vector<32x32xbf16>
      %cst_42 = arith.constant dense<0.000000e+00> : vector<8x32xf32>
      %61 = tpu.matmul %58, %60, %cst_42 {dimension_numbers = #tpu.dot_dimension_numbers<[1], [0], [0], [1], [0, 0, 1, 1], [], []>} : vector<8x32xbf16>, vector<32x32xbf16>, vector<8x32xf32> -> vector<8x32xf32>
      %c1_43 = arith.constant 1 : index
      %c0_44 = arith.constant 0 : index
      %c0_45 = arith.constant 0 : index
      %62 = vector.load %arg9[%c1_43, %c0_44, %c0_45] : memref<2x1x32xf32, #tpu.memory_space<vmem>>, vector<1x1x32xf32>
      %63 = vector.shape_cast %62 : vector<1x1x32xf32> to vector<1x32xf32>
      %64 = vector.broadcast %63 : vector<1x32xf32> to vector<8x32xf32>
      %65 = arith.addf %61, %64 : vector<8x32xf32>
      %cst_46 = arith.constant 0.000000e+00 : f32
      %66 = vector.broadcast %cst_46 : f32 to vector<8x32xf32>
      %67 = arith.maximumf %65, %66 : vector<8x32xf32>
      %68 = arith.truncf %67 : vector<8x32xf32> to vector<8x32xbf16>
      %c0_47 = arith.constant 0 : index
      %c0_48 = arith.constant 0 : index
      %69 = vector.load %arg10[%c0_47, %c0_48] : memref<32x32xbf16, #tpu.memory_space<vmem>>, vector<32x32xbf16>
      %cst_49 = arith.constant dense<0.000000e+00> : vector<8x32xf32>
      %70 = tpu.matmul %68, %69, %cst_49 {dimension_numbers = #tpu.dot_dimension_numbers<[1], [0], [0], [1], [0, 0, 1, 1], [], []>} : vector<8x32xbf16>, vector<32x32xbf16>, vector<8x32xf32> -> vector<8x32xf32>
      %c0_50 = arith.constant 0 : index
      %c0_51 = arith.constant 0 : index
      %71 = vector.load %arg11[%c0_50, %c0_51] : memref<1x32xf32, #tpu.memory_space<vmem>>, vector<1x32xf32>
      %72 = vector.broadcast %71 : vector<1x32xf32> to vector<8x32xf32>
      %73 = arith.addf %70, %72 : vector<8x32xf32>
      %c0_52 = arith.constant 0 : index
      %c0_53 = arith.constant 0 : index
      %74 = vector.load %arg12[%c0_52, %c0_53] : memref<8x32xf32, #tpu.memory_space<vmem>>, vector<8x32xf32>
      tpu.vector_store %arg12[%c0_52, %c0_53], %73 {strides = array<i32>} : memref<8x32xf32, #tpu.memory_space<vmem>>, vector<8x32xf32>,
    } else {
    }
    return
  }
  func.func @transform_0(%arg0: i32, %arg1: i32) -> (i32, i32) {
    %c0_i32 = arith.constant 0 : i32
    %c0_i32_0 = arith.constant 0 : i32
    return %c0_i32, %arg1 : i32, i32
  }
  func.func @transform_1(%arg0: i32, %arg1: i32) -> (i32, i32) {
    %c0_i32 = arith.constant 0 : i32
    %c0_i32_0 = arith.constant 0 : i32
    return %arg1, %c0_i32 : i32, i32
  }
  func.func @transform_2(%arg0: i32, %arg1: i32) -> (i32, i32, i32) {
    %c0_i32 = arith.constant 0 : i32
    %c0_i32_0 = arith.constant 0 : i32
    %c0_i32_1 = arith.constant 0 : i32
    %c0_i32_2 = arith.constant 0 : i32
    return %c0_i32, %c0_i32_0, %c0_i32_1 : i32, i32, i32
  }
  func.func @transform_3(%arg0: i32, %arg1: i32) -> (i32, i32, i32) {
    %c0_i32 = arith.constant 0 : i32
    %c0_i32_0 = arith.constant 0 : i32
    %c0_i32_1 = arith.constant 0 : i32
    %c0_i32_2 = arith.constant 0 : i32
    return %c0_i32, %c0_i32_0, %c0_i32_1 : i32, i32, i32
  }
  func.func @transform_4(%arg0: i32, %arg1: i32) -> (i32, i32) {
    %c0_i32 = arith.constant 0 : i32
    %c0_i32_0 = arith.constant 0 : i32
    %c0_i32_1 = arith.constant 0 : i32
    return %c0_i32, %c0_i32_0 : i32, i32
  }
  func.func @transform_5(%arg0: i32, %arg1: i32) -> (i32, i32) {
    %c0_i32 = arith.constant 0 : i32
    %c0_i32_0 = arith.constant 0 : i32
    %c0_i32_1 = arith.constant 0 : i32
    return %c0_i32, %c0_i32_0 : i32, i32
  }
  func.func @transform_6(%arg0: i32, %arg1: i32) -> (i32, i32, i32) {
    %c0_i32 = arith.constant 0 : i32
    %c0_i32_0 = arith.constant 0 : i32
    %c0_i32_1 = arith.constant 0 : i32
    %c0_i32_2 = arith.constant 0 : i32
    return %c0_i32, %c0_i32_0, %c0_i32_1 : i32, i32, i32
  }
  func.func @transform_7(%arg0: i32, %arg1: i32) -> (i32, i32, i32) {
    %c0_i32 = arith.constant 0 : i32
    %c0_i32_0 = arith.constant 0 : i32
    %c0_i32_1 = arith.constant 0 : i32
    %c0_i32_2 = arith.constant 0 : i32
    return %c0_i32, %c0_i32_0, %c0_i32_1 : i32, i32, i32
  }
  func.func @transform_8(%arg0: i32, %arg1: i32) -> (i32, i32) {
    %c0_i32 = arith.constant 0 : i32
    %c0_i32_0 = arith.constant 0 : i32
    %c0_i32_1 = arith.constant 0 : i32
    return %c0_i32, %c0_i32_0 : i32, i32
  }
  func.func @transform_9(%arg0: i32, %arg1: i32) -> (i32, i32) {
    %c0_i32 = arith.constant 0 : i32
    %c0_i32_0 = arith.constant 0 : i32
    %c0_i32_1 = arith.constant 0 : i32
    return %c0_i32, %c0_i32_0 : i32, i32
  }
  func.func @transform_10(%arg0: i32, %arg1: i32) -> (i32, i32) {
    %c0_i32 = arith.constant 0 : i32
    %c0_i32_0 = arith.constant 0 : i32
    return %arg0, %c0_i32 : i32, i32
  }
}

</mosaic_0001>

<bundles_post_ra>
// kernel: tpu_custom_call.1
= control target key start
LH: loop header
LB: loop body
LE: loop exit
PB: predicated region body
PF: predicated region fallthrough
CT: control target
= control target key end

     0   :  { %15 = vsyncpa [#allocation4], 0  ;;  %s1675_s0 = inlined_call_operand.vmem [shape: s32[1,384], index: 0, kind: input, shape index: {}]   ;;  %s1676_s1 = inlined_call_operand.vmem [shape: bf16[384,32], index: 1, kind: input, shape index: {}]   ;;  %s1677_s2 = inlined_call_operand.vmem [shape: bf16[2,32,32], index: 2, kind: input, shape index: {}]   ;;  %s1678_s3 = inlined_call_operand.vmem [shape: f32[2,1,32], index: 3, kind: input, shape index: {}]   ;;  %s1679_s4 = inlined_call_operand.vmem [shape: bf16[32,32], index: 4, kind: input, shape index: {}]   ;;  %s1680_s5 = inlined_call_operand.vmem [shape: f32[1,32], index: 5, kind: input, shape index: {}]   ;;  %s1681_s6 = inlined_call_operand.vmem [shape: bf16[2,32,32], index: 6, kind: input, shape index: {}]   ;;  %s1682_s7 = inlined_call_operand.vmem [shape: f32[2,1,32], index: 7, kind: input, shape index: {}]   ;;  %s1683_s8 = inlined_call_operand.vmem [shape: bf16[32,32], index: 8, kind: input, shape index: {}]   ;;  %s1684_s9 = inlined_call_operand.vmem [shape: f32[1,32], index: 9, kind: input, shape index: {}]   ;;  %s1685_s10 = inlined_call_operand.hbm [shape: f32[16,32], index: 10, kind: output, shape index: {}]  }
   0x1   :  { %17 = vsyncpa [#allocation4 + $0x1], 0  ;;  %s1418_s13 = smov 0   ;;  %s1420_s14 = smov 0  }
   0x2   :  { %s1422_s15 = smov 0   ;;  %s1424_s16 = smov 0  }
   0x3   :  { %s1426_s17 = smov 0   ;;  %s1428_s18 = smov 0  }
   0x4   :  { %s1430_s19 = smov 0   ;;  %s1432_s20 = smov 0  }
   0x5 LB: > { %1691 = sst [smem:[#allocation6_spill]] %s1339_s15  ;;  %s1030_s21 = sadd.s32 4294967295, %s1359_s20   ;;  %s1359_s20 = sphi %s1432_s20, %s23_s20   ;;  %s1355_s19 = sphi %s1430_s19, %s1705_s19   ;;  %s1351_s18 = sphi %s1428_s18, %s1704_s18   ;;  %s1347_s17 = sphi %s1426_s17, %s1703_s17   ;;  %s1343_s16 = sphi %s1424_s16, %s1702_s16   ;;  %s1339_s15 = sphi %s1422_s15, %s1701_s15   ;;  %s1335_s14 = sphi %s1420_s14, %s1707_s14   ;;  %s1331_s13 = sphi %s1418_s13, %s1706_s13  }
   0x6   : > { %1692 = sst [smem:[#allocation7_spill]] %s1351_s18  ;;  %s1031_s22 = sadd.s32 4294967294, %s1359_s20  }
   0x7   : > { %1693 = sst [smem:[#allocation8_spill]] %s1355_s19  ;;  %s32_s23 = sadd.s32 1, %s1351_s18 }
   0x8   : > { %p33_p0 = scmp.ge.s32.totalorder %s32_s23, 3  ;;  %s35_s24 = sadd.s32 1, %s1355_s19 }
   0x9   : > { %p272_p1 = scmp.ne.s32.totalorder %s1339_s15, %s1335_s14  ;;  %p273_p2 = scmp.eq.s32.totalorder %s1030_s21, 5 }
   0xa   : > { %s1709_s23 = smov (%p33_p0, %s32_s23), 0  ;;  %s1711_s24 = smov (!%p33_p0, %s35_s24), %s1355_s19 }
   0xb   : > { %1694 = sst [smem:[#allocation9_spill]] %s1709_s23  ;;  %p1467_p3 = por %p273_p2, %p272_p1 }
   0xc   : > { %p278_p4 = scmp.ne.s32.totalorder %s1335_s14, %s1331_s13  ;;  %p37_p5 = scmp.ge.s32.totalorder %s1711_s24, 2 }
   0xd   : > { %p279_p6 = scmp.eq.s32.totalorder %s1031_s22, 5  ;;  %p1034_p7 = scmp.ge.s32.totalorder %s1359_s20, 1 }
   0xe   : > { %p336_p8 = scmp.lt.s32.totalorder %s1359_s20, 7  ;;  %s1713_s24 = smov (%p37_p5, %s1711_s24), 0 }
   0xf   : > { %1696 = sst [smem:[#allocation10_spill]] %s1713_s24  ;;  %p1477_p9 = por %p279_p6, %p278_p4 }
  0x10   : > { %p337_p10 = pnand %p1034_p7, %p336_p8  ;;  %s259_s27 = ssub.s32 %s1355_s19, %s1713_s24 }
  0x11   : > { %s262_s28 = sadd.s32 1, %s1339_s15  ;;  %p260_p11 = scmp.eq.s32.totalorder %s259_s27, 0 }
  0x12   : > { %340 = sbr.rel (%p337_p10) target bundleno = 1174 (0x496), region = 60  ;;  %s1689_s30 = sand.u32 (!%p337_p10), 1, %s1335_s14  }
  0x13   : > { %s1485_s29 = scalar_select %p260_p11, %s1339_s15, %s262_s28  }
  0x14   : > { %p377_p12 = scmp.lt.s32.totalorder (!%p337_p10), %s1343_s16, 2  ;;  %s1491_s11 = sshll.u32 (!%p337_p10), %s1689_s30, 3 }
  0x15   : > { %1698 = sst [smem:[#allocation11_spill]] %s1485_s29  ;;  %s1036_s12 = sshll.u32 (!%p337_p10), %s1343_s16, 4 }
  0x16   : > { %p381_p13 = scmp.lt.s32.totalorder (!%p337_p10), %s1036_s12, 47  ;;  %s376_s29 = scalar_lea.vmem (!%p337_p10), [#allocation3], %s1491_s11 }
  0x17   : > { %s1495_s21 = scalar_select %p377_p12, %s1343_s16, 2 }
  0x18   : > { %s1715_s12 = smov (!%p381_p13, %s1036_s12), 47  ;;  %p1038_p0 = scmp.ne.s32.totalorder %s1343_s16, 0 }
  0x19   : > { %s379_s28 = scalar_lea.vmem %s1675_s0, %s1495_s21  ;;  %s1037_s24 = sshll.u32 %s1715_s12, 2 }
  0x1a   : > { %s1504_s18 = scalar_lea.vmem %s1676_s1, %s1037_s24  ;;  %390 = sbr.rel (%p1038_p0) target bundleno = 33 (0x21), region = 64 }
  0x1f   : > { %vm391_vm0 = vcmask 261120   ;;  %v1361_v0 = vmov 0.0  }
  0x20   : > { %392 = vst.msk [vmem:[#allocation2] sm:$0xff] %vm391_vm0, %v1361_v0 }
  0x21 PF: > { %v1174_v1 = vld [vmem:[%s1677_s2 + $0x8] sm:$0xff]  ;;  %v1173_v2 = vld [vmem:[%s1677_s2] sm:$0xff]  ;;  %vm469_vm1 = vcmask 261120   ;;  %v1167_v5 = vld [vmem:[%s1504_s18 + $0x10] sm:$0xff]  ;;  %s1124_s27 = sshll.u32 %s1347_s17, 3  ;;  %p1128_p1 = scmp.ne.s32.totalorder %s1343_s16, 2 }
  0x22   : > { %500 = vmatpush.bf16.msra.mxu0 %v1174_v1  ;;  %v1165_v3 = vld [vmem:[%s1504_s18] sm:$0xff]  ;;  %v1166_v4 = vld [vmem:[%s1504_s18 + $0x8] sm:$0xff]  ;;  %v1168_v6 = vld [vmem:[%s1504_s18 + $0x18] sm:$0xff] }
  0x23   : > { %v1169_v7 = vld [vmem:[%s1504_s18 + $0x20] sm:$0xff]  ;;  %v1170_v8 = vld [vmem:[%s1504_s18 + $0x28] sm:$0xff]  ;;  %v1171_v9 = vld [vmem:[%s1504_s18 + $0x30] sm:$0xff] }
  0x24   : > { %v1176_v10 = vld [vmem:[%s1677_s2 + $0x18] sm:$0xff]  ;;  %v1175_v11 = vld [vmem:[%s1677_s2 + $0x10] sm:$0xff]  ;;  %v1539_v14 = vld [vmem:[%s1678_s3] ss:$0 sm:$0xff] }
  0x25   : > { %619 = vmatpush.bf16.msra.mxu1 %v1176_v10  ;;  %v1172_v12 = vld [vmem:[%s1504_s18 + $0x38] sm:$0xff]  ;;  %v1178_v0 = vld [vmem:[%s1679_s4 + $0x8] sm:$0xff]  ;;  %v1177_v1 = vld [vmem:[%s1679_s4] sm:$0xff] }
  0x26   : > { %501 = vmatpush.bf16.msra.mxu0 %v1173_v2  ;;  %736 = vmatpush.bf16.msra.mxu2 %v1178_v0 }
  0x29   : > { %1079 = vmatmul.msk.bf16.vlgmr.msra.gmra.mxu0 %vm469_vm1, %v1165_v3  ;;  %620 = vmatpush.bf16.msra.mxu1 %v1175_v11 }
  0x2a   : > { %737 = vmatpush.bf16.msra.mxu2 %v1177_v1 }
  0x39   : > { %1080 = vmatmul.msk.bf16.gmra.mxu0 %vm469_vm1, %v1166_v4 }
  0x49   : > { %1081 = vmatmul.msk.bf16.gmra.mxu0 %vm469_vm1, %v1167_v5 }
  0x59   : > { %1082 = vmatmul.msk.bf16.gmra.mxu0 %vm469_vm1, %v1168_v6 }
  0x69   : > { %1083 = vmatmul.msk.bf16.gmra.mxu0 %vm469_vm1, %v1169_v7 }
  0x79   : > { %1084 = vmatmul.msk.bf16.gmra.mxu0 %vm469_vm1, %v1170_v8 }
  0x89   : > { %1085 = vmatmul.msk.bf16.gmra.mxu0 %vm469_vm1, %v1171_v9  ;;  %v1259_v9 = vld [vmem:[%s1678_s3 + $0x1] ss:$0 sm:$0xff] }
  0x99   : > { %1086 = vmatmul.msk.bf16.gmra.mxu0 %vm469_vm1, %v1172_v12 }
  0xa6   : > { %v503_v13 = vpop.f32.mrf.mxu0 }
  0xa7   : > { %v504_v15 = vadd.f32 %v1539_v14, %v503_v13 }
  0xa9   : > { %v543_v18 = vmax.f32 %v504_v15, 0.0 }
  0xae   : > { %v505_v16 = vpop.f32.mrf.mxu0 }
  0xaf   : > { %v506_v17 = vadd.f32 %v1539_v14, %v505_v16 }
  0xb1   : > { %v544_v19 = vmax.f32 %v506_v17, 0.0 }
  0xb3   : > { %v559_v20 = vpack.c.bf16 %v544_v19, %v543_v18 }
  0xb5   : > { %1100 = vmatmul.msk.bf16.vlgmr.msra.gmra.mxu1 %vm469_vm1, %v559_v20 }
  0xb6   : > { %v508_v21 = vpop.f32.mrf.mxu0 }
  0xb7   : > { %v509_v22 = vadd.f32 %v1539_v14, %v508_v21 }
  0xb9   : > { %v545_v25 = vmax.f32 %v509_v22, 0.0 }
  0xbe   : > { %v510_v23 = vpop.f32.mrf.mxu0 }
  0xbf   : > { %v511_v24 = vadd.f32 %v1539_v14, %v510_v23 }
  0xc1   : > { %v546_v26 = vmax.f32 %v511_v24, 0.0 }
  0xc3   : > { %v560_v27 = vpack.c.bf16 %v546_v26, %v545_v25 }
  0xc5   : > { %1101 = vmatmul.msk.bf16.gmra.mxu1 %vm469_vm1, %v560_v27 }
  0xc6   : > { %v513_v28 = vpop.f32.mrf.mxu0 }
  0xc7   : > { %v514_v29 = vadd.f32 %v1539_v14, %v513_v28 }
  0xc9   : > { %v547_v32 = vmax.f32 %v514_v29, 0.0 }
  0xce   : > { %v515_v30 = vpop.f32.mrf.mxu0 }
  0xcf   : > { %v516_v31 = vadd.f32 %v1539_v14, %v515_v30 }
  0xd1   : > { %v548_v33 = vmax.f32 %v516_v31, 0.0 }
  0xd3   : > { %v561_v34 = vpack.c.bf16 %v548_v33, %v547_v32 }
  0xd5   : > { %1102 = vmatmul.msk.bf16.gmra.mxu1 %vm469_vm1, %v561_v34 }
  0xd6   : > { %v518_v35 = vpop.f32.mrf.mxu0 }
  0xd7   : > { %v519_v36 = vadd.f32 %v1539_v14, %v518_v35 }
  0xd9   : > { %v549_v39 = vmax.f32 %v519_v36, 0.0 }
  0xde   : > { %v520_v37 = vpop.f32.mrf.mxu0 }
  0xdf   : > { %v521_v38 = vadd.f32 %v1539_v14, %v520_v37 }
  0xe1   : > { %v550_v40 = vmax.f32 %v521_v38, 0.0 }
  0xe3   : > { %v562_v41 = vpack.c.bf16 %v550_v40, %v549_v39 }
  0xe5   : > { %1103 = vmatmul.msk.bf16.gmra.mxu1 %vm469_vm1, %v562_v41 }
  0xe6   : > { %v523_v42 = vpop.f32.mrf.mxu0 }
  0xe7   : > { %v524_v43 = vadd.f32 %v1539_v14, %v523_v42 }
  0xe9   : > { %v551_v46 = vmax.f32 %v524_v43, 0.0 }
  0xee   : > { %v525_v44 = vpop.f32.mrf.mxu0 }
  0xef   : > { %v526_v45 = vadd.f32 %v1539_v14, %v525_v44 }
  0xf1   : > { %v552_v47 = vmax.f32 %v526_v45, 0.0 }
  0xf3   : > { %v563_v48 = vpack.c.bf16 %v552_v47, %v551_v46 }
  0xf5   : > { %1104 = vmatmul.msk.bf16.gmra.mxu1 %vm469_vm1, %v563_v48 }
  0xf6   : > { %v528_v49 = vpop.f32.mrf.mxu0 }
  0xf7   : > { %v529_v50 = vadd.f32 %v1539_v14, %v528_v49 }
  0xf9   : > { %v553_v53 = vmax.f32 %v529_v50, 0.0 }
  0xfe   : > { %v530_v51 = vpop.f32.mrf.mxu0 }
  0xff   : > { %v531_v52 = vadd.f32 %v1539_v14, %v530_v51 }
 0x101   : > { %v554_v54 = vmax.f32 %v531_v52, 0.0 }
 0x103   : > { %v564_v55 = vpack.c.bf16 %v554_v54, %v553_v53 }
 0x105   : > { %1105 = vmatmul.msk.bf16.gmra.mxu1 %vm469_vm1, %v564_v55 }
 0x106   : > { %v533_v56 = vpop.f32.mrf.mxu0 }
 0x107   : > { %v534_v57 = vadd.f32 %v1539_v14, %v533_v56 }
 0x109   : > { %v555_v60 = vmax.f32 %v534_v57, 0.0 }
 0x10e   : > { %v535_v58 = vpop.f32.mrf.mxu0 }
 0x10f   : > { %v536_v59 = vadd.f32 %v1539_v14, %v535_v58 }
 0x111   : > { %v556_v61 = vmax.f32 %v536_v59, 0.0 }
 0x113   : > { %v565_v62 = vpack.c.bf16 %v556_v61, %v555_v60 }
 0x115   : > { %1106 = vmatmul.msk.bf16.gmra.mxu1 %vm469_vm1, %v565_v62 }
 0x116   : > { %v538_v63 = vpop.f32.mrf.mxu0 }
 0x117   : > { %v539_v2 = vadd.f32 %v1539_v14, %v538_v63 }
 0x119   : > { %v557_v5 = vmax.f32 %v539_v2, 0.0  ;;  %v1260_v2 = vld [vmem:[%s1680_s5] ss:$0 sm:$0xff] }
 0x11e   : > { %v540_v3 = vpop.f32.mrf.mxu0 }
 0x11f   : > { %v541_v4 = vadd.f32 %v1539_v14, %v540_v3 }
 0x121   : > { %v558_v6 = vmax.f32 %v541_v4, 0.0 }
 0x123   : > { %v566_v7 = vpack.c.bf16 %v558_v6, %v557_v5 }
 0x125   : > { %1107 = vmatmul.msk.bf16.gmra.mxu1 %vm469_vm1, %v566_v7 }
 0x132   : > { %v622_v8 = vpop.f32.mrf.mxu1 }
 0x133   : > { %v623_v10 = vadd.f32 %v1259_v9, %v622_v8 }
 0x135   : > { %v662_v13 = vmax.f32 %v623_v10, 0.0 }
 0x13a   : > { %v624_v11 = vpop.f32.mrf.mxu1 }
 0x13b   : > { %v625_v12 = vadd.f32 %v1259_v9, %v624_v11 }
 0x13d   : > { %v663_v15 = vmax.f32 %v625_v12, 0.0 }
 0x13f   : > { %v678_v16 = vpack.c.bf16 %v663_v15, %v662_v13 }
 0x141   : > { %1116 = vmatmul.msk.bf16.vlgmr.msra.gmra.mxu2 %vm469_vm1, %v678_v16 }
 0x142   : > { %v627_v17 = vpop.f32.mrf.mxu1 }
 0x143   : > { %v628_v14 = vadd.f32 %v1259_v9, %v627_v17 }
 0x145   : > { %v664_v20 = vmax.f32 %v628_v14, 0.0 }
 0x14a   : > { %v629_v18 = vpop.f32.mrf.mxu1 }
 0x14b   : > { %v630_v19 = vadd.f32 %v1259_v9, %v629_v18 }
 0x14d   : > { %v665_v21 = vmax.f32 %v630_v19, 0.0 }
 0x14f   : > { %v679_v22 = vpack.c.bf16 %v665_v21, %v664_v20 }
 0x151   : > { %1117 = vmatmul.msk.bf16.gmra.mxu2 %vm469_vm1, %v679_v22 }
 0x152   : > { %v632_v23 = vpop.f32.mrf.mxu1 }
 0x153   : > { %v633_v24 = vadd.f32 %v1259_v9, %v632_v23 }
 0x155   : > { %v666_v27 = vmax.f32 %v633_v24, 0.0 }
 0x15a   : > { %v634_v25 = vpop.f32.mrf.mxu1 }
 0x15b   : > { %v635_v26 = vadd.f32 %v1259_v9, %v634_v25 }
 0x15d   : > { %v667_v28 = vmax.f32 %v635_v26, 0.0 }
 0x15f   : > { %v680_v29 = vpack.c.bf16 %v667_v28, %v666_v27 }
 0x161   : > { %1118 = vmatmul.msk.bf16.gmra.mxu2 %vm469_vm1, %v680_v29 }
 0x162   : > { %v637_v30 = vpop.f32.mrf.mxu1 }
 0x163   : > { %v638_v31 = vadd.f32 %v1259_v9, %v637_v30 }
 0x165   : > { %v668_v34 = vmax.f32 %v638_v31, 0.0 }
 0x16a   : > { %v639_v32 = vpop.f32.mrf.mxu1 }
 0x16b   : > { %v640_v33 = vadd.f32 %v1259_v9, %v639_v32 }
 0x16d   : > { %v669_v35 = vmax.f32 %v640_v33, 0.0 }
 0x16f   : > { %v681_v36 = vpack.c.bf16 %v669_v35, %v668_v34 }
 0x171   : > { %1119 = vmatmul.msk.bf16.gmra.mxu2 %vm469_vm1, %v681_v36 }
 0x172   : > { %v642_v37 = vpop.f32.mrf.mxu1 }
 0x173   : > { %v643_v38 = vadd.f32 %v1259_v9, %v642_v37 }
 0x175   : > { %v670_v41 = vmax.f32 %v643_v38, 0.0 }
 0x17a   : > { %v644_v39 = vpop.f32.mrf.mxu1 }
 0x17b   : > { %v645_v40 = vadd.f32 %v1259_v9, %v644_v39 }
 0x17d   : > { %v671_v42 = vmax.f32 %v645_v40, 0.0 }
 0x17f   : > { %v682_v43 = vpack.c.bf16 %v671_v42, %v670_v41  ;;  %v781_v42 = vlaneseq }
 0x181   : > { %1120 = vmatmul.msk.bf16.gmra.mxu2 %vm469_vm1, %v682_v43  ;;  %v782_v43 = vshrl.u32 %v781_v42, 7 }
 0x182   : > { %v647_v44 = vpop.f32.mrf.mxu1 }
 0x183   : > { %v648_v45 = vadd.f32 %v1259_v9, %v647_v44  ;;  %v783_v44 = vstv %s1124_s27 }
 0x185   : > { %v672_v48 = vmax.f32 %v648_v45, 0.0  ;;  %v784_v45 = vadd.s32 %v783_v44, %v782_v43 }
 0x18a   : > { %v649_v46 = vpop.f32.mrf.mxu1 }
 0x18b   : > { %v650_v47 = vadd.f32 %v1259_v9, %v649_v46  ;;  %v1261_v46 = vld [vmem:[%s379_s28] ss:$0 sm:$0xff] }
 0x18c   : > { %vm786_vm2 = vcmp.eq.s32.totalorder %v784_v45, %v1261_v46 }
 0x18d   : > { %v673_v49 = vmax.f32 %v650_v47, 0.0  ;;  %vm1126_vm3 = vmpackc.low %vm786_vm2, %vm786_vm2  ;;  %v1362_v47 = vmov 1.0|1.0  }
 0x18f   : > { %v683_v50 = vpack.c.bf16 %v673_v49, %v672_v48  ;;  %v790_v48 = vld [vmem:[#allocation2] sm:$0xff] }
 0x191   : > { %1121 = vmatmul.msk.bf16.gmra.mxu2 %vm469_vm1, %v683_v50 }
 0x192   : > { %v652_v51 = vpop.f32.mrf.mxu1 }
 0x193   : > { %v653_v52 = vadd.f32 %v1259_v9, %v652_v51 }
 0x195   : > { %v674_v55 = vmax.f32 %v653_v52, 0.0 }
 0x19a   : > { %v654_v53 = vpop.f32.mrf.mxu1 }
 0x19b   : > { %v655_v54 = vadd.f32 %v1259_v9, %v654_v53 }
 0x19d   : > { %v675_v56 = vmax.f32 %v655_v54, 0.0 }
 0x19f   : > { %v684_v57 = vpack.c.bf16 %v675_v56, %v674_v55 }
 0x1a1   : > { %1122 = vmatmul.msk.bf16.gmra.mxu2 %vm469_vm1, %v684_v57 }
 0x1a2   : > { %v657_v58 = vpop.f32.mrf.mxu1 }
 0x1a3   : > { %v658_v59 = vadd.f32 %v1259_v9, %v657_v58 }
 0x1a5   : > { %v676_v62 = vmax.f32 %v658_v59, 0.0 }
 0x1aa   : > { %v659_v60 = vpop.f32.mrf.mxu1 }
 0x1ab   : > { %v660_v61 = vadd.f32 %v1259_v9, %v659_v60 }
 0x1ad   : > { %v677_v63 = vmax.f32 %v660_v61, 0.0 }
 0x1af   : > { %v685_v0 = vpack.c.bf16 %v677_v63, %v676_v62 }
 0x1b1   : > { %1123 = vmatmul.msk.bf16.gmra.mxu2 %vm469_vm1, %v685_v0 }
 0x1c4   : > { %v739_v1 = vpop.f32.mrf.mxu2 }
 0x1c5   : > { %v740_v4 = vadd.f32 %v1260_v2, %v739_v1 }
 0x1cc   : > { %v741_v3 = vpop.f32.mrf.mxu2 }
 0x1cd   : > { %v742_v5 = vadd.f32 %v1260_v2, %v741_v3 }
 0x1cf   : > { %v791_v6 = vpack.c.bf16 %v742_v5, %v740_v4 }
 0x1d4   : > { %v744_v7 = vpop.f32.mrf.mxu2 }
 0x1d5   : > { %v745_v10 = vadd.f32 %v1260_v2, %v744_v7 }
 0x1dc   : > { %v746_v8 = vpop.f32.mrf.mxu2 }
 0x1dd   : > { %v747_v11 = vadd.f32 %v1260_v2, %v746_v8 }
 0x1df   : > { %v792_v12 = vpack.c.bf16 %v747_v11, %v745_v10 }
 0x1e4   : > { %v749_v9 = vpop.f32.mrf.mxu2 }
 0x1e5   : > { %v750_v15 = vadd.f32 %v1260_v2, %v749_v9 }
 0x1ec   : > { %v751_v13 = vpop.f32.mrf.mxu2 }
 0x1ed   : > { %v752_v16 = vadd.f32 %v1260_v2, %v751_v13 }
 0x1ef   : > { %v793_v17 = vpack.c.bf16 %v752_v16, %v750_v15 }
 0x1f4   : > { %v754_v14 = vpop.f32.mrf.mxu2 }
 0x1f5   : > { %v755_v19 = vadd.f32 %v1260_v2, %v754_v14 }
 0x1fc   : > { %v756_v18 = vpop.f32.mrf.mxu2 }
 0x1fd   : > { %v757_v20 = vadd.f32 %v1260_v2, %v756_v18 }
 0x1ff   : > { %v794_v21 = vpack.c.bf16 %v757_v20, %v755_v19 }
 0x204   : > { %v759_v22 = vpop.f32.mrf.mxu2 }
 0x205   : > { %v760_v40 = vadd.f32 %v1260_v2, %v759_v22 }
 0x20c   : > { %v761_v23 = vpop.f32.mrf.mxu2 }
 0x20d   : > { %v762_v38 = vadd.f32 %v1260_v2, %v761_v23 }
 0x20f   : > { %v795_v41 = vpack.c.bf16 %v762_v38, %v760_v40 }
 0x214   : > { %v764_v24 = vpop.f32.mrf.mxu2 }
 0x215   : > { %v765_v37 = vadd.f32 %v1260_v2, %v764_v24 }
 0x21c   : > { %v766_v25 = vpop.f32.mrf.mxu2 }
 0x21d   : > { %v767_v35 = vadd.f32 %v1260_v2, %v766_v25 }
 0x21f   : > { %v796_v39 = vpack.c.bf16 %v767_v35, %v765_v37 }
 0x224   : > { %v769_v26 = vpop.f32.mrf.mxu2 }
 0x225   : > { %v770_v34 = vadd.f32 %v1260_v2, %v769_v26 }
 0x22c   : > { %v771_v27 = vpop.f32.mrf.mxu2 }
 0x22d   : > { %v772_v32 = vadd.f32 %v1260_v2, %v771_v27 }
 0x22f   : > { %v797_v36 = vpack.c.bf16 %v772_v32, %v770_v34 }
 0x234   : > { %v774_v28 = vpop.f32.mrf.mxu2 }
 0x235   : > { %v775_v30 = vadd.f32 %v1260_v2, %v774_v28 }
 0x23c   : > { %v776_v29 = vpop.f32.mrf.mxu2 }
 0x23d   : > { %v777_v31 = vadd.f32 %v1260_v2, %v776_v29 }
 0x23f   : > { %v798_v33 = vpack.c.bf16 %v777_v31, %v775_v30 }
 0x241   : > { %799 = vmatpush.bf16.msra.mxu3 %v798_v33 }
 0x245   : > { %800 = vmatpush.bf16.msra.mxu3 %v797_v36 }
 0x249   : > { %801 = vmatpush.bf16.msra.mxu3 %v796_v39 }
 0x24d   : > { %802 = vmatpush.bf16.msra.mxu3 %v795_v41 }
 0x251   : > { %803 = vmatpush.bf16.msra.mxu3 %v794_v21 }
 0x255   : > { %804 = vmatpush.bf16.msra.mxu3 %v793_v17 }
 0x259   : > { %805 = vmatpush.bf16.msra.mxu3 %v792_v12 }
 0x25d   : > { %806 = vmatpush.bf16.msra.mxu3 %v791_v6 }
 0x260   : > { %1127 = vmatmul.msk.bf16.vlgmr.msra.gmra.mxu3 %vm1126_vm3, %v1362_v47 }
 0x2e3   : > { %v808_v49 = vpop.f32.mrf.mxu3 }
 0x2e4   : > { %v812_v50 = vadd.f32 %v808_v49, %v790_v48 }
 0x2e6   : > { %813 = vst.msk [vmem:[#allocation2] sm:$0xff] %vm469_vm1, %v812_v50 }
 0x2e7   : > { %817 = sbr.rel (%p1128_p1) target bundleno = 1160 (0x488), region = 68 }
 0x2eb   : > { %v810_v51 = vpop.f32.mrf.mxu3 }
 0x2ec   : > { %v1180_v52 = vld [vmem:[%s1681_s6 + $0x8] sm:$0xff]  ;;  %v1179_v53 = vld [vmem:[%s1681_s6] sm:$0xff]  ;;  %v1182_v56 = vld [vmem:[%s1681_s6 + $0x18] sm:$0xff] }
 0x2ed   : > { %849 = vmatpush.bf16.msra.mxu0 %v1180_v52  ;;  %v818_v54 = vld [vmem:[#allocation2] sm:$0xff]  ;;  %889 = vmatpush.bf16.msra.mxu1 %v1182_v56  ;;  %v1181_v57 = vld [vmem:[%s1681_s6 + $0x10] sm:$0xff]  ;;  %v1184_v0 = vld [vmem:[%s1683_s8 + $0x8] sm:$0xff] }
 0x2ee   : > { %v819_v55 = vpack.c.bf16 %v818_v54, %v818_v54  ;;  %v1262_v58 = vld [vmem:[%s1682_s7] ss:$0 sm:$0xff]  ;;  %927 = vmatpush.bf16.msra.mxu2 %v1184_v0  ;;  %v1263_v2 = vld [vmem:[%s1682_s7 + $0x1] ss:$0 sm:$0xff] }
 0x2ef   : > { %v1183_v1 = vld [vmem:[%s1683_s8] sm:$0xff] }
 0x2f0   : > { %v1264_v8 = vld [vmem:[%s1684_s9] ss:$0 sm:$0xff] }
 0x2f1   : > { %850 = vmatpush.bf16.msra.mxu0 %v1179_v53  ;;  %890 = vmatpush.bf16.msra.mxu1 %v1181_v57 }
 0x2f2   : > { %928 = vmatpush.bf16.msra.mxu2 %v1183_v1 }
 0x2f4   : > { %1137 = vmatmul.msk.bf16.vlgmr.msra.gmra.mxu0 %vm469_vm1, %v819_v55 }
 0x371   : > { %v852_v59 = vpop.f32.mrf.mxu0 }
 0x372   : > { %v853_v60 = vadd.f32 %v1262_v58, %v852_v59 }
 0x374   : > { %v856_v61 = vmax.f32 %v853_v60, 0.0 }
 0x376   : > { %v857_v62 = vpack.c.bf16 %v856_v61, %v856_v61 }
 0x378   : > { %1151 = vmatmul.msk.bf16.vlgmr.msra.gmra.mxu1 %vm469_vm1, %v857_v62 }
 0x379   : > { %v854_v63 = vpop.f32.mrf.mxu0 }
 0x3f5   : > { %v892_v3 = vpop.f32.mrf.mxu1 }
 0x3f6   : > { %v893_v4 = vadd.f32 %v1263_v2, %v892_v3 }
 0x3f8   : > { %v896_v5 = vmax.f32 %v893_v4, 0.0 }
 0x3fa   : > { %v897_v6 = vpack.c.bf16 %v896_v5, %v896_v5 }
 0x3fc   : > { %1160 = vmatmul.msk.bf16.vlgmr.msra.gmra.mxu2 %vm469_vm1, %v897_v6 }
 0x3fd   : > { %v894_v7 = vpop.f32.mrf.mxu1 }
 0x47f   : > { %v930_v10 = vpop.f32.mrf.mxu2 }
 0x480   : > { %v931_v11 = vadd.f32 %v1264_v8, %v930_v10 }
 0x482   : > { %934 = vst.msk [vmem:[%s376_s29] sm:$0xff] %vm469_vm1, %v931_v11 }
 0x487   : > { %v932_v12 = vpop.f32.mrf.mxu2 }
 0x488 PF: > { %s946_s18 = scalar_lea.hbm %s1685_s10, %s1124_s27  ;;  %s948_s19 = sshll.u32 %s376_s29, 4  ;;  %s949_s19 = int_to_ptr.vmem [resolvable:$true] %s948_s19 }
 0x489   : > { %s950_s23 = sshll.u32 %s946_s18, 4  ;;  %s1699_s15 = sand.u32 1, %s1335_s14   ;;  %s951_s23 = int_to_ptr.hbm [resolvable:$true] %s950_s23 }
 0x48a   : > { %s936_s21 = scalar_lea.sflag [#allocation4], %s1699_s15  ;;  %s1279_s28 = sshra.s32 %s951_s23, 4  ;;  %s1280_s28 = int_to_ptr.hbm [resolvable:$true] %s1279_s28 }
 0x48b   : > { %s1281_s24 = scalar_lea.hbm %s1280_s28, 8  ;;  %s1285_s16 = scalar_lea.hbm %s1685_s10, 16 }
 0x48c   : > { %p1282_p2 = scmp.ne.s32.totalorder %s1280_s28, %s1281_s24  ;;  %p1286_p6 = scmp.lt.s32.totalorder %s1280_s28, %s1685_s10 }
 0x48d   : > { %p1287_p7 = scmp.lt.s32.totalorder %s1285_s16, %s1281_s24 }
 0x48e   : > { %p1283_p4 = pnand %p1282_p2, %p1467_p3 }
 0x48f   : > { %p1288_p8 = por %p1287_p7, %p1286_p6 }
 0x490   : > { %p1284_p5 = pneg %p1283_p4 }
 0x492   : > { %p1289_p10 = pnand %p1288_p8, %p1284_p5 }
 0x494   : > { %1292 = shalt.err (!%p1289_p10)
}
 0x495   : > { %1185 = dma.vmem_to_hbm [thread:$0]  (%p1467_p3), %s949_s19, 128, %s951_s23, %s936_s21  }
 0x496 PF: > { %p1191_p11 = scmp.ge.s32.totalorder %s1359_s20, 2  ;;  %s962_s29 = sand.u32 1, %s1331_s13  }
 0x497   : > { %s963_s11 = scalar_lea.sflag [#allocation4], %s962_s29 }
 0x498   : > { %p1188_p12 = pnand %p1191_p11, %p1477_p9 }
 0x49a   : > { %p1189_p13 = pneg %p1188_p12 }
 0x49c   : > { %1326 = dma.done.wait (%p1189_p13), %s963_s11, 128  }
 0x49d   : > { %1328 = vsyncadd (%p1189_p13), %s963_s11, 4294967168  ;;  %s23_s20 = sadd.s32 1, %s1359_s20   ;;  %s1700_s22 = sld [smem:[#allocation6_spill]] }
 0x49e   : > { %p20_p0 = scmp.ge.s32.totalorder %s23_s20, 8   ;;  %s1701_s15 = sld [smem:[#allocation11_spill]] }
 0x49f   : > { %s1702_s16 = sld [smem:[#allocation7_spill]]  ;;  %s1706_s13 = smov %s1335_s14 }
 0x4a0   : > { %s1703_s17 = sld [smem:[#allocation8_spill]]  ;;  %22 = sbr.rel (!%p20_p0) target bundleno = 5 (0x5), region = 110 }
 0x4a1   : > { %s1704_s18 = sld [smem:[#allocation9_spill]] }
 0x4a2   : > { %s1705_s19 = sld [smem:[#allocation10_spill]] }
 0x4a3   : > { %s1707_s14 = smov %s1700_s22 }
 0x4a5   :  { %969 = vsyncpa [#allocation4], 1 }
 0x4a6   :  { %971 = vsyncpa [#allocation4 + $0x1], 1 }

</bundles_post_ra>
